<compile_context>
chip_gen: v5e
topology: v5e:2x2
jax: 0.10.0
libtpu: 0.0.40
codegen_flags: <defaults>
</compile_context>

<pallas_src>
import jax
import jax.numpy as jnp
from jax import lax
from jax.experimental import pallas as pl
from jax.experimental.pallas import tpu as pltpu


_VMEM_BUDGET = 18 * 1024 * 1024   # target double-buffered footprint (bytes)
_VMEM_LIMIT = 32 * 1024 * 1024    # scoped VMEM limit passed to Mosaic


# ---------------------------------------------------------------------------
# Kernels
# ---------------------------------------------------------------------------

def _nt_dot(a, b):
    """a: (M, K), b: (N, K) -> (M, N). Contract last dims of both (MXU)."""
    return lax.dot_general(
        a, b,
        dimension_numbers=(((1,), (1,)), ((), ())),
        preferred_element_type=jnp.float32,
    )


def _vh_kernel(x_ref, w_ref, o_ref):
    """Fast path: full K, full N resident in VMEM; o = x @ w^T."""
    o_ref[...] = _nt_dot(x_ref[...], w_ref[...]).astype(o_ref.dtype)


def _vh_kernel_t(x_ref, w_ref, ot_ref):
    """Lane-dense path: ot = w @ x^T -> (N, tm); tm is a multiple of 128."""
    ot_ref[...] = _nt_dot(w_ref[...], x_ref[...]).astype(ot_ref.dtype)


def _vh_kernel_ktiled(x_ref, w_ref, o_ref, acc_ref):
    """Fallback: K tiled on the grid, f32 accumulator in VMEM."""
    @pl.when(pl.program_id(1) == 0)
    def _():
        acc_ref[...] = jnp.zeros_like(acc_ref)

    acc_ref[...] += _nt_dot(x_ref[...], w_ref[...])

    @pl.when(pl.program_id(1) == pl.num_programs(1) - 1)
    def _():
        o_ref[...] = acc_ref[...].astype(o_ref.dtype)


# ---------------------------------------------------------------------------
# pallas_call wrappers
# ---------------------------------------------------------------------------

def _compiler_params(sem):
    return pltpu.CompilerParams(
        dimension_semantics=sem, vmem_limit_bytes=_VMEM_LIMIT)


def _linear_fullk(x, w, tm):
    """x: (B, K), w: (N, K) -> (B, N). Grid over M only, weight resident."""
    B, K = x.shape
    N = w.shape[0]
    return pl.pallas_call(
        _vh_kernel,
        out_shape=jax.ShapeDtypeStruct((B, N), x.dtype),
        grid_spec=pltpu.PrefetchScalarGridSpec(
            num_scalar_prefetch=0,
            grid=(pl.cdiv(B, tm),),
            in_specs=[
                pl.BlockSpec((tm, K), lambda i: (i, 0)),
                pl.BlockSpec((N, K), lambda i: (0, 0)),   # constant -> DMA'd once
            ],
            out_specs=pl.BlockSpec((tm, N), lambda i: (i, 0)),
        ),
        compiler_params=_compiler_params(("parallel",)),
    )(x, w)


def _linear_fullk_t(x, w, tm):
    """x: (B, K), w: (N, K) -> (N, B) lane-dense output (tm multiple of 128)."""
    B, K = x.shape
    N = w.shape[0]
    return pl.pallas_call(
        _vh_kernel_t,
        out_shape=jax.ShapeDtypeStruct((N, B), x.dtype),
        grid_spec=pltpu.PrefetchScalarGridSpec(
            num_scalar_prefetch=0,
            grid=(pl.cdiv(B, tm),),
            in_specs=[
                pl.BlockSpec((tm, K), lambda i: (i, 0)),
                pl.BlockSpec((N, K), lambda i: (0, 0)),
            ],
            out_specs=pl.BlockSpec((N, tm), lambda i: (0, i)),
        ),
        compiler_params=_compiler_params(("parallel",)),
    )(x, w)


def _linear_ktiled(x, w, tm, tk):
    """x: (B, Kpad), w: (N, Kpad), Kpad % tk == 0 (zero-padded) -> (B, N)."""
    B, Kp = x.shape
    N = w.shape[0]
    return pl.pallas_call(
        _vh_kernel_ktiled,
        out_shape=jax.ShapeDtypeStruct((B, N), x.dtype),
        grid_spec=pltpu.PrefetchScalarGridSpec(
            num_scalar_prefetch=0,
            grid=(pl.cdiv(B, tm), Kp // tk),
            in_specs=[
                pl.BlockSpec((tm, tk), lambda i, k: (i, k)),
                pl.BlockSpec((N, tk), lambda i, k: (0, k)),
            ],
            out_specs=pl.BlockSpec((tm, N), lambda i, k: (i, 0)),
            scratch_shapes=[pltpu.VMEM((tm, N), jnp.float32)],
        ),
        compiler_params=_compiler_params(("parallel", "arbitrary")),
    )(x, w)


# ---------------------------------------------------------------------------
# Tile selection
# ---------------------------------------------------------------------------

def _footprint_fullk(tm, K, N):
    # conservatively count everything double-buffered, f32
    return 4 * (2 * tm * K + 2 * N * K + 2 * tm * N)


def _footprint_ktiled(tm, tk, N):
    return 4 * (2 * tm * tk + 2 * N * tk + 2 * tm * N + tm * N)


def _pick_tm_fullk(B, K, N):
    if B <= 512 and _footprint_fullk(B, K, N) <= _VMEM_BUDGET:
        return B                                # full-batch block(s)
    cands = [c for c in (512, 256, 128, 64, 32, 16, 8) if c < B] or [B]
    for c in cands:
        if _footprint_fullk(c, K, N) <= _VMEM_BUDGET:
            return c
    return cands[-1]


def _pick_tm_lanedense(B, K, N):
    # caller guarantees B >= 128; tm must be a multiple of 128 so the
    # transposed output block's last dim stays lane-aligned.
    cands = [c for c in (512, 256, 128) if c <= B]
    for c in cands:
        if _footprint_fullk(c, K, N) <= _VMEM_BUDGET:
            return c
    return cands[-1]


def _pick_tm_ktiled(B, tk, N):
    if B <= 512 and _footprint_ktiled(B, tk, N) <= _VMEM_BUDGET:
        return B
    cands = [c for c in (512, 256, 128, 64, 32, 16, 8) if c < B] or [B]
    for c in cands:
        if _footprint_ktiled(c, tk, N) <= _VMEM_BUDGET:
            return c
    return cands[-1]


# ---------------------------------------------------------------------------
# Module
# ---------------------------------------------------------------------------

class ValueHeadPallas:
    """JAX/Pallas port of catalyst ValueHead (bias=False path)."""

    def __init__(self, in_features, out_features, num_atoms=1,
                 distribution=None, values_range=None, key=None,
                 _force_k_tiling=False):
        self.in_features = in_features
        self.out_features = out_features
        self.num_atoms = num_atoms
        self.distribution = distribution
        self.values_range = values_range
        if distribution is None:
            assert values_range is None and num_atoms == 1
        elif distribution == "categorical":
            assert values_range is not None and num_atoms > 1
        elif distribution == "quantile":
            assert values_range is None and num_atoms > 1
        else:
            raise NotImplementedError()

        N = out_features * num_atoms
        self._N = N
        # outer_init: small uniform init U(-3e-3, 3e-3), deterministic here.
        # Stored in the PyTorch (N, in_features) layout and NEVER transposed
        # at call time (kernels contract the last dim of both operands).
        key = jax.random.PRNGKey(0) if key is None else key
        self.weight = jax.random.uniform(
            key, (N, in_features), minval=-3e-3, maxval=3e-3, dtype=jnp.float32)
        # TODO(synk): bias=True variant not implemented (module default is bias=False).

        # Decide once whether full-K / full-N blocks fit in VMEM.
        fullk_fits = _footprint_fullk(8, in_features, N) <= _VMEM_BUDGET
        self._k_tiled = bool(_force_k_tiling or not fullk_fits)
        if self._k_tiled:
            # TODO(synk): N-axis tiling not implemented (value heads have small N).
            tk = 512 if in_features >= 512 else 128
            k_pad = -(-in_features // tk) * tk
            if k_pad != in_features:
                # Pad once at init with explicit zeros so the padded K tail can
                # never contribute garbage to the accumulation.
                self.weight = jnp.pad(
                    self.weight, ((0, 0), (0, k_pad - in_features)))
            self._tk = tk
            self._k_pad = k_pad

    def __call__(self, inputs):
        x = inputs.reshape(-1, self.in_features).astype(jnp.float32)
        B = x.shape[0]
        K = self.in_features
        N = self._N

        if self._k_tiled:
            if self._k_pad != K:
                x = jnp.pad(x, ((0, 0), (0, self._k_pad - K)))
            tm = _pick_tm_ktiled(B, self._tk, N)
            y = _linear_ktiled(x, self.weight, tm, self._tk)          # (B, N)
        elif N < 128 and B >= 128:
            # Lane-dense output: compute (N, B) with full-lane stores, then
            # transpose the small result in the wrapper.
            tm = _pick_tm_lanedense(B, K, N)
            y = _linear_fullk_t(x, self.weight, tm).T                 # (B, N)
        else:
            tm = _pick_tm_fullk(B, K, N)
            y = _linear_fullk(x, self.weight, tm)                     # (B, N)

        y = y.reshape(-1, self.out_features, self.num_atoms)
        if self.num_atoms == 1:
            y = jnp.squeeze(y, axis=-1)                               # matches torch squeeze_(-1)
        return y


# ---------------------------------------------------------------------------
# Reference + demo
# ---------------------------------------------------------------------------

def _reference(head, x):
    w = head.weight[:, :head.in_features]          # drop any init-time K padding
    y = x.reshape(-1, head.in_features) @ w.T
    y = y.reshape(-1, head.out_features, head.num_atoms)
    if head.num_atoms == 1:
        y = jnp.squeeze(y, axis=-1)
    return y


if __name__ == "__main__":
    key = jax.random.PRNGKey(0)
    k_in, k_w1, k_w2, k_in3, k_w3, k_in4, k_w4 = jax.random.split(key, 7)

    # Case 1: plain value head (num_atoms=1), small batch -> fast full-K path.
    B, IN, OUT = 8, 32, 4
    x = jax.random.normal(k_in, (B, IN), dtype=jnp.float32)
    head = ValueHeadPallas(IN, OUT, num_atoms=1, key=k_w1)
    out = jax.block_until_ready(head(x))
    ref = _reference(head, x)
    assert out.shape == (B, OUT)
    assert jnp.allclose(out, ref, atol=1e-5, rtol=1e-5)

    # Case 2: distributional (quantile) head -> (B, out_features, num_atoms).
    NUM_ATOMS = 8
    head_q = ValueHeadPallas(IN, OUT, num_atoms=NUM_ATOMS,
                             distribution="quantile", key=k_w2)
    out_q = jax.block_until_ready(head_q(x))
    ref_q = _reference(head_q, x)
    assert out_q.shape == (B, OUT, NUM_ATOMS)
    assert jnp.allclose(out_q, ref_q, atol=1e-5, rtol=1e-5)

    # Case 3: larger batch, tiny N -> lane-dense transposed-output path.
    B3, IN3, OUT3 = 256, 128, 3
    x3 = jax.random.normal(k_in3, (B3, IN3), dtype=jnp.float32)
    head3 = ValueHeadPallas(IN3, OUT3, num_atoms=1, key=k_w3)
    out3 = jax.block_until_ready(head3(x3))
    ref3 = _reference(head3, x3)
    assert out3.shape == (B3, OUT3)
    assert jnp.allclose(out3, ref3, atol=1e-5, rtol=1e-5)

    # Case 4: force the K-tiled fallback (with zero-padded K remainder).
    B4, IN4, OUT4, NA4 = 16, 320, 4, 2
    x4 = jax.random.normal(k_in4, (B4, IN4), dtype=jnp.float32)
    head4 = ValueHeadPallas(IN4, OUT4, num_atoms=NA4, distribution="quantile",
                            key=k_w4, _force_k_tiling=True)
    out4 = jax.block_until_ready(head4(x4))
    ref4 = _reference(head4, x4)
    assert out4.shape == (B4, OUT4, NA4)
    assert jnp.allclose(out4, ref4, atol=1e-5, rtol=1e-5)

    print("KERNEL_OK")
</pallas_src>

<mosaic_0001>
module attributes {stable_mosaic.version = 11 : i64} {
  func.func @_vh_kernel(%arg0: i32, %arg1: memref<8x32xf32, #tpu.memory_space<vmem>>, %arg2: memref<4x32xf32, #tpu.memory_space<vmem>>, %arg3: memref<8x4xf32, #tpu.memory_space<vmem>>) attributes {dimension_semantics = [#tpu.dimension_semantics<parallel>], iteration_bounds = array<i64: 1>, scalar_prefetch = 0 : i64, scratch_operands = 0 : i64, tpu.core_type = #tpu.core_type<tc>, window_params = [{transform_indices = @transform_0, window_bounds = array<i64: 8, 32>}, {pipeline_mode = #tpu.pipeline_mode<synchronous>, transform_indices = @transform_1, window_bounds = array<i64: 4, 32>}, {transform_indices = @transform_2, window_bounds = array<i64: 8, 4>}]} {
    %c0 = arith.constant 0 : index
    %c0_0 = arith.constant 0 : index
    %0 = vector.load %arg1[%c0, %c0_0] : memref<8x32xf32, #tpu.memory_space<vmem>>, vector<8x32xf32>
    %c0_1 = arith.constant 0 : index
    %c0_2 = arith.constant 0 : index
    %1 = vector.load %arg2[%c0_1, %c0_2] : memref<4x32xf32, #tpu.memory_space<vmem>>, vector<4x32xf32>
    %cst = arith.constant dense<0.000000e+00> : vector<8x4xf32>
    %2 = tpu.matmul %0, %1, %cst {dimension_numbers = #tpu.dot_dimension_numbers<[1], [1], [0], [0], [0, 0, 1, 0], [], []>} : vector<8x32xf32>, vector<4x32xf32>, vector<8x4xf32> -> vector<8x4xf32>
    %c0_3 = arith.constant 0 : index
    %c0_4 = arith.constant 0 : index
    %3 = vector.load %arg3[%c0_3, %c0_4] : memref<8x4xf32, #tpu.memory_space<vmem>>, vector<8x4xf32>
    tpu.vector_store %arg3[%c0_3, %c0_4], %2 {strides = array<i32>} : memref<8x4xf32, #tpu.memory_space<vmem>>, vector<8x4xf32>,
    return
  }
  func.func @transform_0(%arg0: i32) -> (i32, i32) {
    %c0_i32 = arith.constant 0 : i32
    %c0_i32_0 = arith.constant 0 : i32
    return %arg0, %c0_i32 : i32, i32
  }
  func.func @transform_1(%arg0: i32) -> (i32, i32) {
    %c0_i32 = arith.constant 0 : i32
    %c0_i32_0 = arith.constant 0 : i32
    %c0_i32_1 = arith.constant 0 : i32
    return %c0_i32, %c0_i32_0 : i32, i32
  }
  func.func @transform_2(%arg0: i32) -> (i32, i32) {
    %c0_i32 = arith.constant 0 : i32
    %c0_i32_0 = arith.constant 0 : i32
    return %arg0, %c0_i32 : i32, i32
  }
}

</mosaic_0001>

<bundles_post_ra>
// kernel: tpu_custom_call.1
= control target key start
LH: loop header
LB: loop body
LE: loop exit
PB: predicated region body
PF: predicated region fallthrough
CT: control target
= control target key end

     0   :  { %7 = vsyncpa [#allocation3], 0  ;;  %s158_s0 = inlined_call_operand.hbm [shape: f32[8,32], index: 0, kind: input, shape index: {}]   ;;  %s159_s1 = inlined_call_operand.hbm [shape: f32[4,32], index: 1, kind: input, shape index: {}]   ;;  %s160_s2 = inlined_call_operand.vmem [shape: f32[8,4], index: 2, kind: output, shape index: {}]  }
   0x1   :  { %s14_s11 = sshll.u32 %s158_s0, 4  ;;  %s15_s11 = int_to_ptr.hbm [resolvable:$true] %s14_s11 }
   0x2   :  { %8 = vsyncpa [#allocation5], 0  ;;  %s132_s12 = smov [#allocation2]   ;;  %s25_s16 = sshll.u32 %s159_s1, 4  ;;  %s26_s16 = int_to_ptr.hbm [resolvable:$true] %s25_s16 }
   0x3   :  { %s16_s13 = sshll.u32 %s132_s12, 4  ;;  %s133_s17 = smov [#allocation4]   ;;  %s17_s13 = int_to_ptr.vmem [resolvable:$true] %s16_s13 }
   0x4   :  { %19 = dma.hbm_to_vmem [thread:$0]  %s15_s11, 128, %s17_s13, [#allocation3]  }
   0x5   :  { %s27_s18 = sshll.u32 %s133_s17, 4  ;;  %s28_s18 = int_to_ptr.vmem [resolvable:$true] %s27_s18 }
   0x6   :  { %30 = dma.hbm_to_vmem [thread:$0]  %s26_s16, 64, %s28_s18, [#allocation5]  }
   0x7   :  { %128 = dma.done.wait [#allocation3], 128  }
   0x8   :  { %129 = vsyncadd [#allocation3], 4294967168 }
   0x9   :  { %130 = dma.done.wait [#allocation5], 64  }
   0xa   :  { %131 = vsyncadd [#allocation5], 4294967232  ;;  %vm41_vm0 = vcmask 261120   ;;  %v40_v0 = vld [vmem:[#allocation4] sm:$0xf]  ;;  %v39_v1 = vld [vmem:[#allocation2] sm:$0xff] }
   0xb   :  { %76 = vmatpush.xpose.msk.msra.mxu0 %vm41_vm0, %v40_v0  ;;  %vm68_vm1 = vcmask 31744  }
   0xe   :  { %77 = vmatmul.msk.f32.vlgmr.msra.gmra.mxu0 %vm41_vm0, %v39_v1 }
  0x8b   :  { %v65_v2 = vpop.f32.mrf.mxu0 }
  0x8c   :  { %69 = vst.msk [vmem:[%s160_s2] sm:$0xff] %vm68_vm1, %v65_v2 }
  0x8d   :  { %74 = vsyncpa [#allocation3], 1 }
  0x8e   :  { %75 = vsyncpa [#allocation5], 1 }

</bundles_post_ra>
